<compile_context>
chip_gen: v6e
topology: v6e:2x2x1
jax: 0.10.0
libtpu: 0.0.40
codegen_flags: <defaults>
</compile_context>

<pallas_src>
import functools

import jax
import jax.numpy as jnp
from jax.experimental import pallas as pl
from jax.experimental.pallas import tpu as pltpu

LAYERS = 48


def _round_up(n, m):
    return ((n + m - 1) // m) * m


def _choose_tile(n, tile_m):
    """Tile size along the lane (row-count) axis: multiple of 128, prefers a
    grid of >= 2 steps when there is enough data (v7x has 2 TensorCores)."""
    n128 = _round_up(max(n, 1), 128)
    tm = min(_round_up(tile_m, 128), n128)
    if n128 // tm < 2 and n128 >= 256:
        tm = _round_up(max(n128 // 2, 128), 128)
    return tm


def _fused_kernel(scal_ref, yT_ref, xT_ref, w1t_ref, w23t_ref,
                  w1_ref, w23_ref, bw_ref, out_ref):
    """One column tile (TM rows on the lane axis):
         comp1 = a*y1 + b*y2
         comp2 = MLP(x)                     (d_in -> 48 -> 48 -> 48 -> 1, ReLU)
         gx    = d comp2 / d x              (exact analytic backprop, grad=1)
       merged output rows: [comp1+comp2 | comp2 | gx]  -> (2 + d_in, TM)."""
    a = scal_ref[0]
    b = scal_ref[1]
    b4 = scal_ref[2]

    yT = yT_ref[...]                          # (2, TM)
    x = xT_ref[...]                           # (d_in, TM)

    comp1 = a * yT[0:1, :] + b * yT[1:2, :]   # (1, TM)

    bw = bw_ref[...]                          # (48, 4) = [b1 | b2 | b3 | w4]
    b1c = bw[:, 0:1]
    b2c = bw[:, 1:2]
    b3c = bw[:, 2:3]
    w4c = bw[:, 3:4]

    # ---- MLP forward (MXU, TM output lanes per pass) ----
    h1 = jnp.maximum(
        jnp.dot(w1t_ref[...], x, preferred_element_type=jnp.float32) + b1c, 0.0)
    h2 = jnp.maximum(
        jnp.dot(w23t_ref[0], h1, preferred_element_type=jnp.float32) + b2c, 0.0)
    h3 = jnp.maximum(
        jnp.dot(w23t_ref[1], h2, preferred_element_type=jnp.float32) + b3c, 0.0)
    # Final (48 -> 1) layer as a sublane (XLU) reduce; keeps it off the MXU.
    comp2 = jnp.sum(h3 * w4c, axis=0, keepdims=True) + b4      # (1, TM)

    # ---- exact input gradient, grad_out = ones (torch.autograd.grad equiv).
    # relu(z) > 0  <=>  z > 0, so the h's double as the backward masks and the
    # pre-activations never stay live (caps vreg pressure).
    g3 = jnp.where(h3 > 0.0, jnp.broadcast_to(w4c, h3.shape), 0.0)
    g2 = jnp.where(h2 > 0.0,
                   jnp.dot(w23_ref[1], g3, preferred_element_type=jnp.float32),
                   0.0)
    g1 = jnp.where(h1 > 0.0,
                   jnp.dot(w23_ref[0], g2, preferred_element_type=jnp.float32),
                   0.0)
    gx = jnp.dot(w1_ref[...], g1, preferred_element_type=jnp.float32)  # (d_in, TM)

    # Direct sub-slice stores (lane-dense, full-width along the lane axis).
    out_ref[0:1, :] = comp1 + comp2
    out_ref[1:2, :] = comp2
    out_ref[2:, :] = gx


def fused_ode_cols(yT, xT, params, scalars, *, tile_m=256):
    """yT: (2, N) f32, xT: (d_in, N) f32.  Returns merged (2 + d_in, N) array:
       row 0 = comp1 + comp2, row 1 = comp2, rows 2: = d comp2 / d x."""
    w1, b1, w2, b2, w3, b3, w4, _b4 = params
    d_in, n = xT.shape
    c = 2 + d_in

    tm = _choose_tile(n, tile_m)
    n_pad = _round_up(n, tm)
    if n_pad != n:
        pad = ((0, 0), (0, n_pad - n))
        yT = jnp.pad(yT, pad)
        xT = jnp.pad(xT, pad)

    # One-time (wrapper-side) weight reshuffles; the kernel has no transposes.
    w1t = jnp.transpose(w1)                                    # (48, d_in)  fwd
    w23t = jnp.stack([jnp.transpose(w2), jnp.transpose(w3)])   # (2, 48, 48) fwd
    w23 = jnp.stack([w2, w3])                                  # (2, 48, 48) bwd
    bw = jnp.concatenate([jnp.reshape(b1, (LAYERS, 1)),
                          jnp.reshape(b2, (LAYERS, 1)),
                          jnp.reshape(b3, (LAYERS, 1)),
                          jnp.reshape(w4, (LAYERS, 1))], axis=1)  # (48, 4)

    cols = lambda i: (0, i)
    const2 = lambda i: (0, 0)
    const3 = lambda i: (0, 0, 0)

    out = pl.pallas_call(
        _fused_kernel,
        out_shape=jax.ShapeDtypeStruct((c, n_pad), jnp.float32),
        grid_spec=pltpu.PrefetchScalarGridSpec(
            num_scalar_prefetch=0,
            grid=(n_pad // tm,),
            in_specs=[
                pl.BlockSpec(memory_space=pltpu.MemorySpace.SMEM),  # [a, b, b4]
                pl.BlockSpec((2, tm), cols),                        # y^T cols
                pl.BlockSpec((d_in, tm), cols),                     # x^T cols
                pl.BlockSpec((LAYERS, d_in), const2),               # W1^T (fwd)
                pl.BlockSpec((2, LAYERS, LAYERS), const3),          # [W2^T, W3^T]
                pl.BlockSpec((d_in, LAYERS), const2),               # W1 (bwd)
                pl.BlockSpec((2, LAYERS, LAYERS), const3),          # [W2, W3]
                pl.BlockSpec((LAYERS, 4), const2),                  # [b1|b2|b3|w4]
            ],
            out_specs=pl.BlockSpec((c, tm), cols),
        ),
        compiler_params=pltpu.CompilerParams(
            dimension_semantics=("parallel",)),
    )(scalars, yT, xT, w1t, w23t, w1, w23, bw)
    return out[:, :n]


def init_params(key, input_num):
    """Deterministic synthetic init matching nn.Linear shapes (weights stored
    as (in, out), i.e. transposed vs torch's (out, in))."""
    ks = jax.random.split(key, 8)

    def lin(kw, kb, fan_in, fan_out):
        bound = 1.0 / jnp.sqrt(fan_in)
        w = jax.random.uniform(kw, (fan_in, fan_out), jnp.float32, -bound, bound)
        b = jax.random.uniform(kb, (1, fan_out), jnp.float32, -bound, bound)
        return w, b

    w1, b1 = lin(ks[0], ks[1], input_num, LAYERS)
    w2, b2 = lin(ks[2], ks[3], LAYERS, LAYERS)
    w3, b3 = lin(ks[4], ks[5], LAYERS, LAYERS)
    w4, b4 = lin(ks[6], ks[7], LAYERS, 1)
    return (w1, b1, w2, b2, w3, b3, w4, b4)


def neural_ode_ab_forward(t, z, params, a, b, *, n_zone, y_phy, tile_m=256):
    """Matches NeuralODE_ab.forward for linear=0.  z: (B, S, 2 + input_num)."""
    del t  # unused, as in the PyTorch module
    input_num = 1 + 2 * n_zone
    B, S, C = z.shape
    assert C == 2 + input_num

    b4 = params[7]
    scalars = jnp.stack([jnp.asarray(a, jnp.float32),
                         jnp.asarray(b, jnp.float32),
                         jnp.reshape(b4, ()).astype(jnp.float32)])

    z_flat = z.reshape(B * S, C).astype(jnp.float32)
    # One-time layout change so batch rows ride the lane axis inside the kernel.
    yT = jnp.transpose(z_flat[:, 0:2])     # (2, N)
    xT = jnp.transpose(z_flat[:, 2:])      # (input_num, N)

    merged = fused_ode_cols(yT, xT, params, scalars, tile_m=tile_m)  # (C, N)
    merged = jnp.transpose(merged).reshape(B, S, C)

    out_sum = merged[:, :, 0:1]            # comp1 + comp2
    comp2 = merged[:, :, 1:2]
    gx = merged[:, :, 2:]                  # d comp2 / d x  (all input_num cols)

    if y_phy == 1:
        if n_zone >= 19:
            # TODO(synk): random.sample selection for n_zone >= 19 is
            # nondeterministic in PyTorch; not reproduced here.
            raise NotImplementedError(
                "random.sample selection for n_zone >= 19 is nondeterministic")
        relu_neg_gx = jnp.maximum(-gx, 0.0)      # single vectorized relu(-u_x)
        u_y1 = jnp.full_like(comp2, a)           # d comp1 / d y1
        u_y2 = jnp.full_like(comp2, b)           # d comp1 / d y2
        # sele_list == range(n_zone) here, so u_x columns are gx columns in order.
        u_x = [gx[:, :, i:i + 1] for i in range(input_num)]
        com_phy = ([jnp.maximum(u_y1, 0.0), jnp.maximum(u_y2, 0.0)]
                   + [relu_neg_gx[:, :, i:i + 1] for i in range(input_num)])
        com_phy_ori = [u_y1, u_y2] + u_x
        return out_sum, comp2, com_phy, com_phy_ori
    else:  # y_phy == 0: pure list plumbing around comp2
        com_phy = [comp2, comp2] + [comp2 for _ in range(input_num)]
        com_phy_ori = [comp2, comp2] + [comp2 for _ in range(input_num)]
        return out_sum, comp2, com_phy, com_phy_ori


if __name__ == "__main__":
    n_zone = 4
    y_phy = 1
    input_num = 1 + 2 * n_zone            # 9
    B, S = 2, 8                           # flattened rows = 16 (padded to tile)

    key = jax.random.PRNGKey(0)
    k_param, k_z = jax.random.split(key)
    params = init_params(k_param, input_num)
    a = jnp.float32(-0.2)
    b = jnp.float32(-0.5)

    z = jax.random.normal(k_z, (B, S, 2 + input_num), dtype=jnp.float32)
    t = jnp.float32(0.0)

    fwd = jax.jit(functools.partial(neural_ode_ab_forward,
                                    n_zone=n_zone, y_phy=y_phy))
    out_sum, comp2, com_phy, com_phy_ori = fwd(t, z, params, a, b)
    jax.block_until_ready((out_sum, comp2, com_phy, com_phy_ori))
    print("KERNEL_OK")
</pallas_src>

<mosaic_0001>
module attributes {stable_mosaic.version = 11 : i64} {
  func.func @_fused_kernel(%arg0: i32, %arg1: memref<3xf32, #tpu.memory_space<smem>>, %arg2: memref<2x128xf32, #tpu.memory_space<vmem>>, %arg3: memref<9x128xf32, #tpu.memory_space<vmem>>, %arg4: memref<48x9xf32, #tpu.memory_space<vmem>>, %arg5: memref<2x48x48xf32, #tpu.memory_space<vmem>>, %arg6: memref<9x48xf32, #tpu.memory_space<vmem>>, %arg7: memref<2x48x48xf32, #tpu.memory_space<vmem>>, %arg8: memref<48x4xf32, #tpu.memory_space<vmem>>, %arg9: memref<11x128xf32, #tpu.memory_space<vmem>>) attributes {dimension_semantics = [#tpu.dimension_semantics<parallel>], iteration_bounds = array<i64: 1>, scalar_prefetch = 0 : i64, scratch_operands = 0 : i64, tpu.core_type = #tpu.core_type<tc>, window_params = [{transform_indices = @transform_0, window_bounds = array<i64: 3>}, {transform_indices = @transform_1, window_bounds = array<i64: 2, 128>}, {transform_indices = @transform_2, window_bounds = array<i64: 9, 128>}, {pipeline_mode = #tpu.pipeline_mode<synchronous>, transform_indices = @transform_3, window_bounds = array<i64: 48, 9>}, {pipeline_mode = #tpu.pipeline_mode<synchronous>, transform_indices = @transform_4, window_bounds = array<i64: 2, 48, 48>}, {pipeline_mode = #tpu.pipeline_mode<synchronous>, transform_indices = @transform_5, window_bounds = array<i64: 9, 48>}, {pipeline_mode = #tpu.pipeline_mode<synchronous>, transform_indices = @transform_6, window_bounds = array<i64: 2, 48, 48>}, {pipeline_mode = #tpu.pipeline_mode<synchronous>, transform_indices = @transform_7, window_bounds = array<i64: 48, 4>}, {transform_indices = @transform_8, window_bounds = array<i64: 11, 128>}]} {
    %c0 = arith.constant 0 : index
    %0 = memref.load %arg1[%c0] : memref<3xf32, #tpu.memory_space<smem>>
    %c1 = arith.constant 1 : index
    %1 = memref.load %arg1[%c1] : memref<3xf32, #tpu.memory_space<smem>>
    %c2 = arith.constant 2 : index
    %2 = memref.load %arg1[%c2] : memref<3xf32, #tpu.memory_space<smem>>
    %c0_0 = arith.constant 0 : index
    %c0_1 = arith.constant 0 : index
    %3 = vector.load %arg2[%c0_0, %c0_1] : memref<2x128xf32, #tpu.memory_space<vmem>>, vector<2x128xf32>
    %c0_2 = arith.constant 0 : index
    %c0_3 = arith.constant 0 : index
    %4 = vector.load %arg3[%c0_2, %c0_3] : memref<9x128xf32, #tpu.memory_space<vmem>>, vector<9x128xf32>
    %5 = vector.extract_strided_slice %3 {offsets = [0, 0], sizes = [1, 128], strides = [1, 1]} : vector<2x128xf32> to vector<1x128xf32>
    %6 = vector.broadcast %0 : f32 to vector<1x128xf32>
    %7 = arith.mulf %6, %5 : vector<1x128xf32>
    %8 = vector.extract_strided_slice %3 {offsets = [1, 0], sizes = [1, 128], strides = [1, 1]} : vector<2x128xf32> to vector<1x128xf32>
    %9 = vector.broadcast %1 : f32 to vector<1x128xf32>
    %10 = arith.mulf %9, %8 : vector<1x128xf32>
    %11 = arith.addf %7, %10 : vector<1x128xf32>
    %c0_4 = arith.constant 0 : index
    %c0_5 = arith.constant 0 : index
    %12 = vector.load %arg8[%c0_4, %c0_5] : memref<48x4xf32, #tpu.memory_space<vmem>>, vector<48x4xf32>
    %13 = vector.extract_strided_slice %12 {offsets = [0, 0], sizes = [48, 1], strides = [1, 1]} : vector<48x4xf32> to vector<48x1xf32>
    %14 = vector.extract_strided_slice %12 {offsets = [0, 1], sizes = [48, 1], strides = [1, 1]} : vector<48x4xf32> to vector<48x1xf32>
    %15 = vector.extract_strided_slice %12 {offsets = [0, 2], sizes = [48, 1], strides = [1, 1]} : vector<48x4xf32> to vector<48x1xf32>
    %16 = vector.extract_strided_slice %12 {offsets = [0, 3], sizes = [48, 1], strides = [1, 1]} : vector<48x4xf32> to vector<48x1xf32>
    %c0_6 = arith.constant 0 : index
    %c0_7 = arith.constant 0 : index
    %17 = vector.load %arg4[%c0_6, %c0_7] : memref<48x9xf32, #tpu.memory_space<vmem>>, vector<48x9xf32>
    %cst = arith.constant dense<0.000000e+00> : vector<48x128xf32>
    %18 = tpu.matmul %17, %4, %cst {dimension_numbers = #tpu.dot_dimension_numbers<[1], [0], [0], [1], [0, 0, 1, 1], [], []>} : vector<48x9xf32>, vector<9x128xf32>, vector<48x128xf32> -> vector<48x128xf32>
    %19 = vector.broadcast %13 : vector<48x1xf32> to vector<48x128xf32>
    %20 = arith.addf %18, %19 : vector<48x128xf32>
    %cst_8 = arith.constant 0.000000e+00 : f32
    %21 = vector.broadcast %cst_8 : f32 to vector<48x128xf32>
    %22 = arith.maximumf %20, %21 : vector<48x128xf32>
    %c0_9 = arith.constant 0 : index
    %c0_10 = arith.constant 0 : index
    %c0_11 = arith.constant 0 : index
    %23 = vector.load %arg5[%c0_9, %c0_10, %c0_11] : memref<2x48x48xf32, #tpu.memory_space<vmem>>, vector<1x48x48xf32>
    %24 = vector.shape_cast %23 : vector<1x48x48xf32> to vector<48x48xf32>
    %cst_12 = arith.constant dense<0.000000e+00> : vector<48x128xf32>
    %25 = tpu.matmul %24, %22, %cst_12 {dimension_numbers = #tpu.dot_dimension_numbers<[1], [0], [0], [1], [0, 0, 1, 1], [], []>} : vector<48x48xf32>, vector<48x128xf32>, vector<48x128xf32> -> vector<48x128xf32>
    %26 = vector.broadcast %14 : vector<48x1xf32> to vector<48x128xf32>
    %27 = arith.addf %25, %26 : vector<48x128xf32>
    %cst_13 = arith.constant 0.000000e+00 : f32
    %28 = vector.broadcast %cst_13 : f32 to vector<48x128xf32>
    %29 = arith.maximumf %27, %28 : vector<48x128xf32>
    %c1_14 = arith.constant 1 : index
    %c0_15 = arith.constant 0 : index
    %c0_16 = arith.constant 0 : index
    %30 = vector.load %arg5[%c1_14, %c0_15, %c0_16] : memref<2x48x48xf32, #tpu.memory_space<vmem>>, vector<1x48x48xf32>
    %31 = vector.shape_cast %30 : vector<1x48x48xf32> to vector<48x48xf32>
    %cst_17 = arith.constant dense<0.000000e+00> : vector<48x128xf32>
    %32 = tpu.matmul %31, %29, %cst_17 {dimension_numbers = #tpu.dot_dimension_numbers<[1], [0], [0], [1], [0, 0, 1, 1], [], []>} : vector<48x48xf32>, vector<48x128xf32>, vector<48x128xf32> -> vector<48x128xf32>
    %33 = vector.broadcast %15 : vector<48x1xf32> to vector<48x128xf32>
    %34 = arith.addf %32, %33 : vector<48x128xf32>
    %cst_18 = arith.constant 0.000000e+00 : f32
    %35 = vector.broadcast %cst_18 : f32 to vector<48x128xf32>
    %36 = arith.maximumf %34, %35 : vector<48x128xf32>
    %37 = vector.broadcast %16 : vector<48x1xf32> to vector<48x128xf32>
    %38 = arith.mulf %36, %37 : vector<48x128xf32>
    %cst_19 = arith.constant dense<0.000000e+00> : vector<128xf32>
    %39 = vector.multi_reduction <add>, %38, %cst_19 [0] : vector<48x128xf32> to vector<128xf32>
    %40 = vector.shape_cast %39 : vector<128xf32> to vector<1x128xf32>
    %41 = vector.broadcast %2 : f32 to vector<1x128xf32>
    %42 = arith.addf %40, %41 : vector<1x128xf32>
    %cst_20 = arith.constant 0.000000e+00 : f32
    %43 = vector.broadcast %cst_20 : f32 to vector<48x128xf32>
    %44 = arith.cmpf ogt, %36, %43 : vector<48x128xf32>
    %45 = vector.shape_cast %16 : vector<48x1xf32> to vector<48x1xf32>
    %46 = vector.broadcast %45 : vector<48x1xf32> to vector<48x128xf32>
    %cst_21 = arith.constant 0.000000e+00 : f32
    %47 = vector.broadcast %cst_21 : f32 to vector<48x128xf32>
    %48 = arith.select %44, %46, %47 : vector<48x128xi1>, vector<48x128xf32>
    %cst_22 = arith.constant 0.000000e+00 : f32
    %49 = vector.broadcast %cst_22 : f32 to vector<48x128xf32>
    %50 = arith.cmpf ogt, %29, %49 : vector<48x128xf32>
    %c1_23 = arith.constant 1 : index
    %c0_24 = arith.constant 0 : index
    %c0_25 = arith.constant 0 : index
    %51 = vector.load %arg7[%c1_23, %c0_24, %c0_25] : memref<2x48x48xf32, #tpu.memory_space<vmem>>, vector<1x48x48xf32>
    %52 = vector.shape_cast %51 : vector<1x48x48xf32> to vector<48x48xf32>
    %cst_26 = arith.constant dense<0.000000e+00> : vector<48x128xf32>
    %53 = tpu.matmul %52, %48, %cst_26 {dimension_numbers = #tpu.dot_dimension_numbers<[1], [0], [0], [1], [0, 0, 1, 1], [], []>} : vector<48x48xf32>, vector<48x128xf32>, vector<48x128xf32> -> vector<48x128xf32>
    %cst_27 = arith.constant 0.000000e+00 : f32
    %54 = vector.broadcast %cst_27 : f32 to vector<48x128xf32>
    %55 = arith.select %50, %53, %54 : vector<48x128xi1>, vector<48x128xf32>
    %cst_28 = arith.constant 0.000000e+00 : f32
    %56 = vector.broadcast %cst_28 : f32 to vector<48x128xf32>
    %57 = arith.cmpf ogt, %22, %56 : vector<48x128xf32>
    %c0_29 = arith.constant 0 : index
    %c0_30 = arith.constant 0 : index
    %c0_31 = arith.constant 0 : index
    %58 = vector.load %arg7[%c0_29, %c0_30, %c0_31] : memref<2x48x48xf32, #tpu.memory_space<vmem>>, vector<1x48x48xf32>
    %59 = vector.shape_cast %58 : vector<1x48x48xf32> to vector<48x48xf32>
    %cst_32 = arith.constant dense<0.000000e+00> : vector<48x128xf32>
    %60 = tpu.matmul %59, %55, %cst_32 {dimension_numbers = #tpu.dot_dimension_numbers<[1], [0], [0], [1], [0, 0, 1, 1], [], []>} : vector<48x48xf32>, vector<48x128xf32>, vector<48x128xf32> -> vector<48x128xf32>
    %cst_33 = arith.constant 0.000000e+00 : f32
    %61 = vector.broadcast %cst_33 : f32 to vector<48x128xf32>
    %62 = arith.select %57, %60, %61 : vector<48x128xi1>, vector<48x128xf32>
    %c0_34 = arith.constant 0 : index
    %c0_35 = arith.constant 0 : index
    %63 = vector.load %arg6[%c0_34, %c0_35] : memref<9x48xf32, #tpu.memory_space<vmem>>, vector<9x48xf32>
    %cst_36 = arith.constant dense<0.000000e+00> : vector<9x128xf32>
    %64 = tpu.matmul %63, %62, %cst_36 {dimension_numbers = #tpu.dot_dimension_numbers<[1], [0], [0], [1], [0, 0, 1, 1], [], []>} : vector<9x48xf32>, vector<48x128xf32>, vector<9x128xf32> -> vector<9x128xf32>
    %65 = arith.addf %11, %42 : vector<1x128xf32>
    %c0_37 = arith.constant 0 : index
    %c0_38 = arith.constant 0 : index
    %66 = vector.load %arg9[%c0_37, %c0_38] : memref<11x128xf32, #tpu.memory_space<vmem>>, vector<1x128xf32>
    tpu.vector_store %arg9[%c0_37, %c0_38], %65 {strides = array<i32>} : memref<11x128xf32, #tpu.memory_space<vmem>>, vector<1x128xf32>,
    %c1_39 = arith.constant 1 : index
    %c0_40 = arith.constant 0 : index
    %67 = vector.load %arg9[%c1_39, %c0_40] : memref<11x128xf32, #tpu.memory_space<vmem>>, vector<1x128xf32>
    tpu.vector_store %arg9[%c1_39, %c0_40], %42 {strides = array<i32>} : memref<11x128xf32, #tpu.memory_space<vmem>>, vector<1x128xf32>,
    %c2_41 = arith.constant 2 : index
    %c0_42 = arith.constant 0 : index
    %68 = vector.load %arg9[%c2_41, %c0_42] : memref<11x128xf32, #tpu.memory_space<vmem>>, vector<9x128xf32>
    tpu.vector_store %arg9[%c2_41, %c0_42], %64 {strides = array<i32>} : memref<11x128xf32, #tpu.memory_space<vmem>>, vector<9x128xf32>,
    return
  }
  func.func @transform_0(%arg0: i32) -> i32 {
    %c0_i32 = arith.constant 0 : i32
    %c0_i32_0 = arith.constant 0 : i32
    return %c0_i32 : i32
  }
  func.func @transform_1(%arg0: i32) -> (i32, i32) {
    %c0_i32 = arith.constant 0 : i32
    %c0_i32_0 = arith.constant 0 : i32
    return %c0_i32, %arg0 : i32, i32
  }
  func.func @transform_2(%arg0: i32) -> (i32, i32) {
    %c0_i32 = arith.constant 0 : i32
    %c0_i32_0 = arith.constant 0 : i32
    return %c0_i32, %arg0 : i32, i32
  }
  func.func @transform_3(%arg0: i32) -> (i32, i32) {
    %c0_i32 = arith.constant 0 : i32
    %c0_i32_0 = arith.constant 0 : i32
    %c0_i32_1 = arith.constant 0 : i32
    return %c0_i32, %c0_i32_0 : i32, i32
  }
  func.func @transform_4(%arg0: i32) -> (i32, i32, i32) {
    %c0_i32 = arith.constant 0 : i32
    %c0_i32_0 = arith.constant 0 : i32
    %c0_i32_1 = arith.constant 0 : i32
    %c0_i32_2 = arith.constant 0 : i32
    return %c0_i32, %c0_i32_0, %c0_i32_1 : i32, i32, i32
  }
  func.func @transform_5(%arg0: i32) -> (i32, i32) {
    %c0_i32 = arith.constant 0 : i32
    %c0_i32_0 = arith.constant 0 : i32
    %c0_i32_1 = arith.constant 0 : i32
    return %c0_i32, %c0_i32_0 : i32, i32
  }
  func.func @transform_6(%arg0: i32) -> (i32, i32, i32) {
    %c0_i32 = arith.constant 0 : i32
    %c0_i32_0 = arith.constant 0 : i32
    %c0_i32_1 = arith.constant 0 : i32
    %c0_i32_2 = arith.constant 0 : i32
    return %c0_i32, %c0_i32_0, %c0_i32_1 : i32, i32, i32
  }
  func.func @transform_7(%arg0: i32) -> (i32, i32) {
    %c0_i32 = arith.constant 0 : i32
    %c0_i32_0 = arith.constant 0 : i32
    %c0_i32_1 = arith.constant 0 : i32
    return %c0_i32, %c0_i32_0 : i32, i32
  }
  func.func @transform_8(%arg0: i32) -> (i32, i32) {
    %c0_i32 = arith.constant 0 : i32
    %c0_i32_0 = arith.constant 0 : i32
    return %c0_i32, %arg0 : i32, i32
  }
}

</mosaic_0001>

<bundles_post_ra>
// kernel: neural_ode_ab_forward.1
= control target key start
LH: loop header
LB: loop body
LE: loop exit
PB: predicated region body
PF: predicated region fallthrough
CT: control target
= control target key end

     0   :  { %13 = vsyncpa [#allocation3], 0  ;;  %s1517_s0 = inlined_call_operand.vmem [shape: f32[3], index: 0, kind: input, shape index: {}]   ;;  %s1518_s1 = inlined_call_operand.vmem [shape: f32[2,128], index: 1, kind: input, shape index: {}]   ;;  %s1519_s2 = inlined_call_operand.vmem [shape: f32[9,128], index: 2, kind: input, shape index: {}]   ;;  %s1520_s3 = inlined_call_operand.vmem [shape: f32[48,9], index: 3, kind: input, shape index: {}]   ;;  %s1521_s4 = inlined_call_operand.vmem [shape: f32[2,48,48], index: 4, kind: input, shape index: {}]   ;;  %s1522_s5 = inlined_call_operand.vmem [shape: f32[9,48], index: 5, kind: input, shape index: {}]   ;;  %s1523_s6 = inlined_call_operand.vmem [shape: f32[2,48,48], index: 6, kind: input, shape index: {}]   ;;  %s1524_s7 = inlined_call_operand.vmem [shape: f32[48,4], index: 7, kind: input, shape index: {}]   ;;  %s1525_s8 = inlined_call_operand.vmem [shape: f32[11,128], index: 8, kind: output, shape index: {}]  }
   0x1   :  { %s20_s29 = sshll.u32 %s1517_s0, 4  ;;  %s21_s29 = int_to_ptr.vmem [resolvable:$true] %s20_s29 }
   0x2   :  { %s1187_s30 = scalar_lea.vmem %s21_s29, 16  ;;  %p1192_p1 = scmp.lt.s32.totalorder %s21_s29, %s21_s29 }
   0x3   :  { %p1188_p0 = scmp.ne.s32.totalorder %s21_s29, %s1187_s30  ;;  %p1193_p2 = scmp.lt.s32.totalorder %s1187_s30, %s1187_s30 }
   0x5   :  { %p1194_p3 = por %p1193_p2, %p1192_p1 }
   0x7   :  { %p1195_p4 = pnand %p1194_p3, %p1188_p0 }
   0x9   :  { %1198 = shalt.err (!%p1195_p4)
}
   0xa   :  { %s1201_s9 = smov [#allocation2]  }
   0xb   :  { %23 = dma.vmem_to_smem %s21_s29, 16, %s1201_s9, [#allocation3]  }
   0xc   :  { %1199 = dma.done.wait [#allocation3], 16  }
   0xd   :  { %1200 = vsyncadd [#allocation3], 4294967280 }
   0xe   :  { %41 = sfence }
   0xf   :  { %v47_v0 = vld [vmem:[%s1519_s2 + $0x8] sm:$0x1]  ;;  %vm117_vm0 = vcmask 1040384   ;;  %v46_v1 = vld [vmem:[%s1519_s2] sm:$0xff]  ;;  %vm98_vm1 = vcmask 72704   ;;  %v1202_v4 = vmov 0  }
  0x10   :  { %v62_v2 = vld [vmem:[%s1520_s3] sm:$0xff]  ;;  %1062 = vmatprep.subr.msk.mxu0 %vm117_vm0, %v47_v0  ;;  %v63_v3 = vld [vmem:[%s1520_s3 + $0x8] sm:$0xff]  ;;  %1179 = vset.pattern.permute.xlu0 %v1202_v4  ;;  %v64_v6 = vld [vmem:[%s1520_s3 + $0x10] sm:$0xff]  ;;  %vm252_vm2 = vcmask 392192   ;;  %v1203_v16 = vmov 1   ;;  %v1204_v47 = vmov 2  }
  0x11   :  { %1066 = vmatprep.mubr.msk.f32.mxu0 %vm98_vm1, %v62_v2  ;;  %1063 = vmatpush3.msk.msra.mxu0 %vm117_vm0, %v47_v0  ;;  %v1270_v5 = vld [vmem:[%s1524_s7 + $0x28] sm:$0xff]  ;;  %v1279_v7 = vld [vmem:[%s1524_s7 + $0x18] sm:$0xff]  ;;  %v1284_v8 = vld [vmem:[%s1524_s7 + $0x20] sm:$0xff]  ;;  %v1205_v48 = vmov 3   ;;  %s42_s13 = sld [smem:[#allocation2]] }
  0x12   :  { %1064 = vmatprep.subr.mxu0 %v46_v1  ;;  %95 = vperm.xlu0 %1179, %v1270_v5   ;;  %v65_v9 = vld [vmem:[%s1520_s3 + $0x18] sm:$0xff]  ;;  %v1295_v10 = vld [vmem:[%s1524_s7 + $0x10] sm:$0xff]  ;;  %v66_v11 = vld [vmem:[%s1520_s3 + $0x20] sm:$0xff] }
  0x13   :  { %1065 = vmatpush3.msra.mxu0 %v46_v1  ;;  %1180 = vset.pattern.permute.xlu1 %v1202_v4  ;;  %v1304_v12 = vld [vmem:[%s1524_s7 + $0x8] sm:$0xff]  ;;  %v1315_v14 = vld [vmem:[%s1524_s7] sm:$0xff]  ;;  %v224_v42 = vld [vmem:[%s1521_s4 + $0x10] sm:$0xff]  ;;  %s934_s7 = sld [smem:[#allocation2 + $0x2]] }
  0x14   :  { %1067 = vmatmul.mubr.msk.f32.vlgmr.msra.gmra.mxu0 %vm98_vm1, %v63_v3  ;;  %85 = vperm.xlu1 %1180, %v1279_v7   ;;  %v67_v13 = vld [vmem:[%s1520_s3 + $0x28] sm:$0xff]  ;;  %v222_v15 = vld [vmem:[%s1521_s4] sm:$0xff]  ;;  %v225_v43 = vld [vmem:[%s1521_s4 + $0x18] sm:$0xff] }
  0x15   :  { %1069 = vmatprep.mubr.msk.f32.mxu0 %vm98_vm1, %v64_v6  ;;  %1087 = vmatprep.mubr.msk.f32.mxu1 %vm252_vm2, %v222_v15  ;;  %v223_v41 = vld [vmem:[%s1521_s4 + $0x8] sm:$0xff]  ;;  %v226_v44 = vld [vmem:[%s1521_s4 + $0x20] sm:$0xff]  ;;  %v948_v46 = vld [vmem:[%s1521_s4 + $0x30] sm:$0xff] }
  0x16   :  { %90 = vperm.xlu0 %1179, %v1284_v8   ;;  %v227_v45 = vld [vmem:[%s1521_s4 + $0x28] sm:$0xff] }
  0x18   :  { %1070 = vmatmul.mubr.msk.f32.gmra.mxu0 %vm98_vm1, %v65_v9  ;;  %80 = vperm.xlu1 %1180, %v1295_v10   ;;  %v949_v9 = vld [vmem:[%s1521_s4 + $0x38] sm:$0xff] }
  0x19   :  { %1072 = vmatprep.mubr.msk.f32.mxu0 %vm98_vm1, %v66_v11  ;;  %v951_v11 = vld [vmem:[%s1521_s4 + $0x48] sm:$0xff] }
  0x1a   :  { %75 = vperm.xlu0 %1179, %v1304_v12  }
  0x1c   :  { %1073 = vmatmul.mubr.msk.f32.gmra.mxu0 %vm98_vm1, %v67_v13  ;;  %70 = vperm.xlu1 %1180, %v1315_v14   ;;  %v953_v13 = vld [vmem:[%s1521_s4 + $0x58] sm:$0xff] }
  0x1d   :  { %1108 = vmatprep.mubr.msk.f32.mxu0 %vm252_vm2, %v948_v46 }
  0x1e   :  { %1181 = vset.pattern.permute.xlu0 %v1203_v16 }
  0x1f   :  { %249 = vperm.xlu0 %1181, %v1270_v5  }
  0x20   :  { %1182 = vset.pattern.permute.xlu1 %v1203_v16 }
  0x21   :  { %245 = vperm.xlu1 %1182, %v1284_v8  }
  0x23   :  { %237 = vperm.xlu0 %1181, %v1295_v10  }
  0x25   :  { %241 = vperm.xlu1 %1182, %v1279_v7  }
  0x27   :  { %229 = vperm.xlu0 %1181, %v1315_v14  }
  0x29   :  { %233 = vperm.xlu1 %1182, %v1304_v12  }
  0x2b   :  { %1184 = vset.pattern.permute.xlu0 %v1204_v47 }
  0x2c   :  { %396 = vperm.xlu0 %1184, %v1284_v8  }
  0x2d   :  { %1183 = vset.pattern.permute.xlu1 %v1204_v47 }
  0x2e   :  { %400 = vperm.xlu1 %1183, %v1270_v5  }
  0x30   :  { %388 = vperm.xlu0 %1184, %v1295_v10  }
  0x32   :  { %392 = vperm.xlu1 %1183, %v1279_v7  }
  0x34   :  { %384 = vperm.xlu0 %1184, %v1304_v12  }
  0x36   :  { %1185 = vset.pattern.permute.xlu1 %v1205_v48 }
  0x37   :  { %543 = vperm.xlu1 %1185, %v1270_v5  }
  0x38   :  { %380 = vperm.xlu0 %1184, %v1315_v14  }
  0x3b   :  { %539 = vperm.xlu1 %1185, %v1284_v8  }
  0x3c   :  { %1186 = vset.pattern.permute.xlu0 %v1205_v48 }
  0x3d   :  { %527 = vperm.xlu0 %1186, %v1304_v12   ;;  %v952_v12 = vld [vmem:[%s1521_s4 + $0x50] sm:$0xff] }
  0x3f   :  { %535 = vperm.xlu1 %1185, %v1279_v7  }
  0x43   :  { %531 = vperm.xlu1 %1185, %v1295_v10   ;;  %v950_v10 = vld [vmem:[%s1521_s4 + $0x40] sm:$0xff]  ;;  %s933_s4 = sld [smem:[#allocation2 + $0x1]] }
  0x47   :  { %523 = vperm.xlu1 %1185, %v1315_v14   ;;  %v960_v14 = vld [vmem:[%s1523_s6 + $0x30] sm:$0xff] }
  0x8d   :  { %v96_v17 = vpop.permute.xlu0 %95 }
  0x8f   :  { %v86_v19 = vpop.permute.xlu1 %85 }
  0x91   :  { %v91_v22 = vpop.permute.xlu0 %90 }
  0x93   :  { %v81_v24 = vpop.permute.xlu1 %80 }
  0x95   :  { %v76_v31 = vpop.permute.xlu0 %75 }
  0x97   :  { %v71_v34 = vpop.permute.xlu1 %70 }
  0x9a   :  { %v250_v51 = vpop.permute.xlu0 %249 }
  0x9c   :  { %v246_v49 = vpop.permute.xlu1 %245 }
  0x9e   :  { %v238_v56 = vpop.permute.xlu0 %237 }
  0xa0   :  { %v242_v54 = vpop.permute.xlu1 %241 }
  0xa2   :  { %v230_v2 = vpop.permute.xlu0 %229 }
  0xa4   :  { %v234_v63 = vpop.permute.xlu1 %233 }
  0xa9   :  { %v401_v15 = vpop.permute.xlu1 %400 }
  0xad   :  { %v393_v16 = vpop.permute.xlu1 %392 }
  0xd4   :  { %v1068_v18 = vpop.f32.mrf.mxu0 }
  0xd5   :  { %v193_v35 = vadd.f32 %v1068_v18, %v76_v31  ;;  %v397_v18 = vpop.permute.xlu0 %396 }
  0xd6   :  { %v187_v20 = vpop.f32.mrf.mxu0 }
  0xd7   :  { %v188_v37 = vadd.f32 %v187_v20, %v71_v34  ;;  %v1344_v39 = vmax.f32 %v193_v35, 0.0 }
  0xd8   :  { %v1071_v21 = vpop.f32.mrf.mxu0 }
  0xd9   :  { %v203_v28 = vadd.f32 %v1071_v21, %v86_v19  ;;  %v1348_v40 = vmax.f32 %v188_v37, 0.0  ;;  %v389_v20 = vpop.permute.xlu0 %388 }
  0xda   :  { %v197_v23 = vpop.f32.mrf.mxu0 }
  0xdb   :  { %v198_v32 = vadd.f32 %v197_v23, %v81_v24  ;;  %v1336_v36 = vmax.f32 %v203_v28, 0.0 }
  0xdc   :  { %v1074_v25 = vpop.f32.mrf.mxu0 }
  0xdd   :  { %v213_v26 = vadd.f32 %v1074_v25, %v96_v17  ;;  %v1340_v38 = vmax.f32 %v198_v32, 0.0  ;;  %v544_v17 = vpop.permute.xlu1 %543  ;;  %vm712_vm1 = vcmp.gt.f32.partialorder %v1336_v36, 0.0 }
  0xde   :  { %v207_v27 = vpop.f32.mrf.mxu0 }
  0xdf   :  { %v1330_v29 = vmax.f32 %v213_v26, 0.0  ;;  %v208_v30 = vadd.f32 %v207_v27, %v91_v22  ;;  %v385_v22 = vpop.permute.xlu0 %384 }
  0xe1   :  { %v1332_v33 = vmax.f32 %v208_v30, 0.0  ;;  %1075 = vmatprep.subr.mxu1 %v1330_v29  ;;  %v540_v19 = vpop.permute.xlu1 %539  ;;  %vm714_vm15 = vcmp.gt.f32.partialorder %v1330_v29, 0.0 }
  0xe2   :  { %1076 = vmatpush3.msra.mxu1 %v1330_v29  ;;  %v841_v29 = vld [vmem:[%s1522_s5 + $0x8] sm:$0x1] }
  0xe3   :  { %1077 = vmatprep.subr.mxu1 %v1332_v33  ;;  %v381_v24 = vpop.permute.xlu0 %380  ;;  %vm713_vm0 = vcmp.gt.f32.partialorder %v1332_v33, 0.0 }
  0xe4   :  { %1078 = vmatpush3.msra.mxu1 %v1332_v33 }
  0xe5   :  { %1079 = vmatprep.subr.mxu1 %v1336_v36  ;;  %v536_v21 = vpop.permute.xlu1 %535 }
  0xe6   :  { %1080 = vmatpush3.msra.mxu1 %v1336_v36 }
  0xe7   :  { %1081 = vmatprep.subr.mxu1 %v1340_v38  ;;  %v528_v37 = vpop.permute.xlu0 %527 }
  0xe8   :  { %1082 = vmatpush3.msra.mxu1 %v1340_v38 }
  0xe9   :  { %1083 = vmatprep.subr.mxu1 %v1344_v39  ;;  %v532_v23 = vpop.permute.xlu1 %531 }
  0xea   :  { %1084 = vmatpush3.msra.mxu1 %v1344_v39 }
  0xeb   :  { %1085 = vmatprep.subr.mxu1 %v1348_v40 }
  0xec   :  { %1086 = vmatpush3.msra.mxu1 %v1348_v40 }
  0xed   :  { %1088 = vmatmul.mubr.msk.f32.vlgmr.msra.gmra.mxu1 %vm252_vm2, %v223_v41  ;;  %v524_v31 = vpop.permute.xlu1 %523 }
  0xee   :  { %1090 = vmatprep.mubr.msk.f32.mxu1 %vm252_vm2, %v224_v42 }
  0xf1   :  { %1091 = vmatmul.mubr.msk.f32.gmra.mxu1 %vm252_vm2, %v225_v43 }
  0xf2   :  { %1093 = vmatprep.mubr.msk.f32.mxu1 %vm252_vm2, %v226_v44 }
  0xf5   :  { %1094 = vmatmul.mubr.msk.f32.gmra.mxu1 %vm252_vm2, %v227_v45 }
  0xf6   :  { %1129 = vmatprep.mubr.msk.f32.mxu1 %vm252_vm2, %v960_v14 }
 0x1ad   :  { %v1089_v50 = vpop.f32.mrf.mxu1 }
 0x1ae   :  { %v343_v3 = vadd.f32 %v1089_v50, %v234_v63  ;;  %v45_v63 = vld [vmem:[%s1518_s1] sm:$0x3] }
 0x1af   :  { %v337_v52 = vpop.f32.mrf.mxu1 }
 0x1b0   :  { %v338_v5 = vadd.f32 %v337_v52, %v230_v2  ;;  %v1404_v7 = vmax.f32 %v343_v3, 0.0 }
 0x1b1   :  { %v1092_v53 = vpop.f32.mrf.mxu1 }
 0x1b2   :  { %v353_v60 = vadd.f32 %v1092_v53, %v242_v54  ;;  %v1408_v8 = vmax.f32 %v338_v5, 0.0  ;;  %vm578_vm13 = vcmp.gt.f32.partialorder %v1404_v7, 0.0 }
 0x1b3   :  { %v347_v55 = vpop.f32.mrf.mxu1 }
 0x1b4   :  { %v348_v0 = vadd.f32 %v347_v55, %v238_v56  ;;  %v1396_v4 = vmax.f32 %v353_v60, 0.0  ;;  %vm577_vm14 = vcmp.gt.f32.partialorder %v1408_v8, 0.0 }
 0x1b5   :  { %v1095_v57 = vpop.f32.mrf.mxu1 }
 0x1b6   :  { %v363_v58 = vadd.f32 %v1095_v57, %v250_v51  ;;  %v1400_v6 = vmax.f32 %v348_v0, 0.0  ;;  %v50_v0 = vstv %s933_s4  ;;  %vm580_vm11 = vcmp.gt.f32.partialorder %v1396_v4, 0.0 }
 0x1b7   :  { %v357_v59 = vpop.f32.mrf.mxu1  ;;  %v51_v3 = vmul.f32 %v50_v0, %v45_v63 }
 0x1b8   :  { %v1390_v61 = vmax.f32 %v363_v58, 0.0  ;;  %v358_v62 = vadd.f32 %v357_v59, %v246_v49  ;;  %vm579_vm12 = vcmp.gt.f32.partialorder %v1400_v6, 0.0 }
 0x1b9   :  { %v53_v14 = vrot.slane %v51_v3, 1 }
 0x1ba   :  { %v1392_v1 = vmax.f32 %v358_v62, 0.0  ;;  %1096 = vmatprep.subr.mxu0 %v1390_v61  ;;  %vm582_vm9 = vcmp.gt.f32.partialorder %v1390_v61, 0.0 }
 0x1bb   :  { %1097 = vmatpush3.msra.mxu0 %v1390_v61  ;;  %v716_v61 = vld [vmem:[%s1523_s6 + $0x8] sm:$0xff] }
 0x1bc   :  { %1098 = vmatprep.subr.mxu0 %v1392_v1  ;;  %vm581_vm10 = vcmp.gt.f32.partialorder %v1392_v1, 0.0 }
 0x1bd   :  { %1099 = vmatpush3.msra.mxu0 %v1392_v1  ;;  %v717_v1 = vld [vmem:[%s1523_s6 + $0x10] sm:$0xff] }
 0x1be   :  { %1100 = vmatprep.subr.mxu0 %v1396_v4 }
 0x1bf   :  { %1101 = vmatpush3.msra.mxu0 %v1396_v4  ;;  %v718_v4 = vld [vmem:[%s1523_s6 + $0x18] sm:$0xff] }
 0x1c0   :  { %1102 = vmatprep.subr.mxu0 %v1400_v6 }
 0x1c1   :  { %1103 = vmatpush3.msra.mxu0 %v1400_v6  ;;  %v719_v6 = vld [vmem:[%s1523_s6 + $0x20] sm:$0xff] }
 0x1c2   :  { %1104 = vmatprep.subr.mxu0 %v1404_v7 }
 0x1c3   :  { %1105 = vmatpush3.msra.mxu0 %v1404_v7  ;;  %v720_v7 = vld [vmem:[%s1523_s6 + $0x28] sm:$0xff] }
 0x1c4   :  { %1106 = vmatprep.subr.mxu0 %v1408_v8 }
 0x1c5   :  { %1107 = vmatpush3.msra.mxu0 %v1408_v8  ;;  %v840_v8 = vld [vmem:[%s1522_s5] sm:$0xff] }
 0x1c6   :  { %1109 = vmatmul.mubr.msk.f32.vlgmr.msra.gmra.mxu0 %vm252_vm2, %v949_v9  ;;  %v48_v9 = vstv %s42_s13 }
 0x1c7   :  { %1111 = vmatprep.mubr.msk.f32.mxu0 %vm252_vm2, %v950_v10  ;;  %v961_v10 = vld [vmem:[%s1523_s6 + $0x38] sm:$0xff] }
 0x1ca   :  { %1112 = vmatmul.mubr.msk.f32.gmra.mxu0 %vm252_vm2, %v951_v11 }
 0x1cb   :  { %1114 = vmatprep.mubr.msk.f32.mxu0 %vm252_vm2, %v952_v12  ;;  %v962_v12 = vld [vmem:[%s1523_s6 + $0x40] sm:$0xff] }
 0x1ce   :  { %1115 = vmatmul.mubr.msk.f32.gmra.mxu0 %vm252_vm2, %v953_v13  ;;  %v49_v13 = vmul.f32 %v48_v9, %v45_v63 }
 0x286   :  { %v1110_v25 = vpop.f32.mrf.mxu0 }
 0x287   :  { %v493_v26 = vadd.f32 %v1110_v25, %v385_v22  ;;  %v965_v22 = vld [vmem:[%s1523_s6 + $0x58] sm:$0xff]  ;;  %v715_v25 = vld [vmem:[%s1523_s6] sm:$0xff] }
 0x288   :  { %v487_v27 = vpop.f32.mrf.mxu0  ;;  %1150 = vmatprep.mubr.msk.f32.mxu0 %vm252_vm2, %v715_v25 }
 0x289   :  { %v488_v28 = vadd.f32 %v487_v27, %v381_v24  ;;  %v517_v32 = vmax.f32 %v493_v26, 0.0 }
 0x28a   :  { %v1113_v30 = vpop.f32.mrf.mxu0 }
 0x28b   :  { %v516_v34 = vmax.f32 %v488_v28, 0.0  ;;  %v503_v35 = vadd.f32 %v1113_v30, %v393_v16  ;;  %v547_v45 = vmul.f32 %v528_v37, %v517_v32  ;;  %vm566_vm7 = vcmp.gt.f32.partialorder %v517_v32, 0.0  ;;  %v963_v16 = vld [vmem:[%s1523_s6 + $0x48] sm:$0xff] }
 0x28c   :  { %v497_v41 = vpop.f32.mrf.mxu0 }
 0x28d   :  { %v546_v42 = vmul.f32 %v524_v31, %v516_v34  ;;  %v498_v43 = vadd.f32 %v497_v41, %v389_v20  ;;  %v519_v46 = vmax.f32 %v503_v35, 0.0  ;;  %vm565_vm8 = vcmp.gt.f32.partialorder %v516_v34, 0.0 }
 0x28e   :  { %v1116_v44 = vpop.f32.mrf.mxu0  ;;  %v55_v20 = vadd.f32 %v53_v14, %v49_v13 }
 0x28f   :  { %v518_v47 = vmax.f32 %v498_v43, 0.0  ;;  %v513_v48 = vadd.f32 %v1116_v44, %v401_v15  ;;  %v552_v50 = vadd.f32 %v547_v45, %v546_v42  ;;  %v549_v54 = vmul.f32 %v536_v21, %v519_v46 }
 0x290   :  { %v507_v49 = vpop.f32.mrf.mxu0  ;;  %vm568_vm5 = vcmp.gt.f32.partialorder %v519_v46, 0.0 }
 0x291   :  { %v548_v51 = vmul.f32 %v532_v23, %v518_v47  ;;  %v508_v52 = vadd.f32 %v507_v49, %v397_v18  ;;  %v521_v53 = vmax.f32 %v513_v48, 0.0  ;;  %vm567_vm6 = vcmp.gt.f32.partialorder %v518_v47, 0.0  ;;  %v964_v18 = vld [vmem:[%s1523_s6 + $0x50] sm:$0xff] }
 0x293   :  { %v553_v55 = vadd.f32 %v552_v50, %v548_v51  ;;  %v520_v56 = vmax.f32 %v508_v52, 0.0  ;;  %vm570_vm3 = vcmp.gt.f32.partialorder %v521_v53, 0.0  ;;  %v551_v59 = vmul.f32 %v544_v17, %v521_v53 }
 0x294   :  { %1117 = vmatprep.subr.msk.mxu1 %vm570_vm3, %v544_v17 }
 0x295   :  { %v550_v57 = vmul.f32 %v540_v19, %v520_v56  ;;  %v554_v58 = vadd.f32 %v553_v55, %v549_v54  ;;  %vm569_vm4 = vcmp.gt.f32.partialorder %v520_v56, 0.0  ;;  %1118 = vmatpush3.msk.msra.mxu1 %vm570_vm3, %v544_v17  ;;  %vm711_vm3 = vcmp.gt.f32.partialorder %v1340_v38, 0.0 }
 0x296   :  { %1119 = vmatprep.subr.msk.mxu1 %vm569_vm4, %v540_v19 }
 0x297   :  { %v555_v60 = vadd.f32 %v554_v58, %v550_v57  ;;  %1120 = vmatpush3.msk.msra.mxu1 %vm569_vm4, %v540_v19  ;;  %v563_v19 = vstv %s934_s7  ;;  %vm710_vm4 = vcmp.gt.f32.partialorder %v1344_v39, 0.0 }
 0x298   :  { %1121 = vmatprep.subr.msk.mxu1 %vm568_vm5, %v536_v21 }
 0x299   :  { %v556_v62 = vadd.f32 %v555_v60, %v551_v59  ;;  %1122 = vmatpush3.msk.msra.mxu1 %vm568_vm5, %v536_v21  ;;  %vm709_vm5 = vcmp.gt.f32.partialorder %v1348_v40, 0.0 }
 0x29a   :  { %1123 = vmatprep.subr.msk.mxu1 %vm567_vm6, %v532_v23 }
 0x29b   :  { %v557_v2 = vrot.slane %v556_v62, 4  ;;  %1124 = vmatpush3.msk.msra.mxu1 %vm567_vm6, %v532_v23 }
 0x29c   :  { %1125 = vmatprep.subr.msk.mxu1 %vm566_vm7, %v528_v37 }
 0x29d   :  { %v558_v5 = vadd.f32 %v557_v2, %v556_v62  ;;  %1126 = vmatpush3.msk.msra.mxu1 %vm566_vm7, %v528_v37 }
 0x29e   :  { %1127 = vmatprep.subr.msk.mxu1 %vm565_vm8, %v524_v31 }
 0x29f   :  { %v559_v11 = vrot.slane %v558_v5, 2  ;;  %1128 = vmatpush3.msk.msra.mxu1 %vm565_vm8, %v524_v31 }
 0x2a0   :  { %1130 = vmatmul.mubr.msk.f32.vlgmr.msra.gmra.mxu1 %vm252_vm2, %v961_v10 }
 0x2a1   :  { %v560_v15 = vadd.f32 %v559_v11, %v558_v5  ;;  %1132 = vmatprep.mubr.msk.f32.mxu1 %vm252_vm2, %v962_v12 }
 0x2a3   :  { %v561_v17 = vrot.slane %v560_v15, 1 }
 0x2a4   :  { %1133 = vmatmul.mubr.msk.f32.gmra.mxu1 %vm252_vm2, %v963_v16 }
 0x2a5   :  { %v562_v21 = vadd.f32 %v561_v17, %v560_v15  ;;  %1135 = vmatprep.mubr.msk.f32.mxu1 %vm252_vm2, %v964_v18 }
 0x2a7   :  { %v564_v23 = vadd.f32 %v563_v19, %v562_v21 }
 0x2a8   :  { %1136 = vmatmul.mubr.msk.f32.gmra.mxu1 %vm252_vm2, %v965_v22 }
 0x2a9   :  { %v923_v24 = vadd.f32 %v564_v23, %v55_v20  ;;  %925 = vst [vmem:[%s1525_s8 + $0x1] sm:$0x1] %v564_v23  ;;  %1171 = vmatprep.mubr.msk.f32.mxu1 %vm252_vm2, %v840_v8 }
 0x2ab   :  { %924 = vst [vmem:[%s1525_s8] sm:$0x1] %v923_v24 }
 0x360   :  { %v1131_v26 = vpop.f32.mrf.mxu1 }
 0x362   :  { %v674_v27 = vpop.f32.mrf.mxu1 }
 0x364   :  { %v1134_v28 = vpop.f32.mrf.mxu1 }
 0x366   :  { %v684_v30 = vpop.f32.mrf.mxu1 }
 0x368   :  { %v1137_v31 = vpop.f32.mrf.mxu1 }
 0x369   :  { %1138 = vmatprep.subr.msk.mxu0 %vm582_vm9, %v1137_v31 }
 0x36a   :  { %v694_v32 = vpop.f32.mrf.mxu1  ;;  %1139 = vmatpush3.msk.msra.mxu0 %vm582_vm9, %v1137_v31 }
 0x36b   :  { %1140 = vmatprep.subr.msk.mxu0 %vm581_vm10, %v694_v32 }
 0x36c   :  { %1141 = vmatpush3.msk.msra.mxu0 %vm581_vm10, %v694_v32 }
 0x36d   :  { %1142 = vmatprep.subr.msk.mxu0 %vm580_vm11, %v1134_v28 }
 0x36e   :  { %1143 = vmatpush3.msk.msra.mxu0 %vm580_vm11, %v1134_v28 }
 0x36f   :  { %1144 = vmatprep.subr.msk.mxu0 %vm579_vm12, %v684_v30 }
 0x370   :  { %1145 = vmatpush3.msk.msra.mxu0 %vm579_vm12, %v684_v30 }
 0x371   :  { %1146 = vmatprep.subr.msk.mxu0 %vm578_vm13, %v1131_v26 }
 0x372   :  { %1147 = vmatpush3.msk.msra.mxu0 %vm578_vm13, %v1131_v26 }
 0x373   :  { %1148 = vmatprep.subr.msk.mxu0 %vm577_vm14, %v674_v27 }
 0x374   :  { %1149 = vmatpush3.msk.msra.mxu0 %vm577_vm14, %v674_v27 }
 0x375   :  { %1151 = vmatmul.mubr.msk.f32.vlgmr.msra.gmra.mxu0 %vm252_vm2, %v716_v61 }
 0x376   :  { %1153 = vmatprep.mubr.msk.f32.mxu0 %vm252_vm2, %v717_v1 }
 0x379   :  { %1154 = vmatmul.mubr.msk.f32.gmra.mxu0 %vm252_vm2, %v718_v4 }
 0x37a   :  { %1156 = vmatprep.mubr.msk.f32.mxu0 %vm252_vm2, %v719_v6 }
 0x37d   :  { %1157 = vmatmul.mubr.msk.f32.gmra.mxu0 %vm252_vm2, %v720_v7 }
 0x435   :  { %v1152_v34 = vpop.f32.mrf.mxu0 }
 0x437   :  { %v805_v35 = vpop.f32.mrf.mxu0 }
 0x439   :  { %v1155_v37 = vpop.f32.mrf.mxu0 }
 0x43b   :  { %v815_v41 = vpop.f32.mrf.mxu0 }
 0x43d   :  { %v1158_v42 = vpop.f32.mrf.mxu0 }
 0x43e   :  { %1159 = vmatprep.subr.msk.mxu1 %vm714_vm15, %v1158_v42 }
 0x43f   :  { %v825_v43 = vpop.f32.mrf.mxu0  ;;  %1160 = vmatpush3.msk.msra.mxu1 %vm714_vm15, %v1158_v42 }
 0x440   :  { %1161 = vmatprep.subr.msk.mxu1 %vm713_vm0, %v825_v43 }
 0x441   :  { %1162 = vmatpush3.msk.msra.mxu1 %vm713_vm0, %v825_v43 }
 0x442   :  { %1163 = vmatprep.subr.msk.mxu1 %vm712_vm1, %v1155_v37 }
 0x443   :  { %1164 = vmatpush3.msk.msra.mxu1 %vm712_vm1, %v1155_v37 }
 0x444   :  { %1165 = vmatprep.subr.msk.mxu1 %vm711_vm3, %v815_v41 }
 0x445   :  { %1166 = vmatpush3.msk.msra.mxu1 %vm711_vm3, %v815_v41 }
 0x446   :  { %1167 = vmatprep.subr.msk.mxu1 %vm710_vm4, %v1152_v34 }
 0x447   :  { %1168 = vmatpush3.msk.msra.mxu1 %vm710_vm4, %v1152_v34 }
 0x448   :  { %1169 = vmatprep.subr.msk.mxu1 %vm709_vm5, %v805_v35 }
 0x449   :  { %1170 = vmatpush3.msk.msra.mxu1 %vm709_vm5, %v805_v35 }
 0x44a   :  { %1172 = vmatmul.mubr.msk.f32.vlgmr.msra.gmra.mxu1 %vm252_vm2, %v841_v29 }
 0x50a   :  { %v1173_v33 = vpop.f32.mrf.mxu1 }
 0x50b   :  { %927 = vst [vmem:[%s1525_s8 + $0xa] sm:$0x1] %v1173_v33 }
 0x50c   :  { %v914_v36 = vpop.f32.mrf.mxu1 }
 0x50d   :  { %926 = vst [vmem:[%s1525_s8 + $0x2] sm:$0xff] %v914_v36 }
 0x50e   :  { %932 = vsyncpa [#allocation3], 1 }

</bundles_post_ra>
